<compile_context>
chip_gen: v7x
topology: tpu7x:2x2x1
jax: 0.10.0
libtpu: 0.0.40
codegen_flags: <defaults>
</compile_context>

<pallas_src>
import jax
import jax.numpy as jnp
from jax.experimental import pallas as pl
from jax.experimental.pallas import tpu as pltpu


_LANE = 128
_PAD_CAP_BYTES = 8 * 1024 * 1024       # padded (in + out) VMEM per grid step
_VMEM_LIMIT_BYTES = 48 * 1024 * 1024   # scoped VMEM limit (safe on v5e/v6e/v7x)


def _ceil_to(x, m):
    return -(-x // m) * m


def _divisors(n):
    return [d for d in range(1, n + 1) if n % d == 0]


def _sublane_pack(dtype):
    # Native second-minor packing: 8 rows for 4-byte, 16 for 2-byte, 32 for 1-byte.
    return {4: 8, 2: 16, 1: 32}.get(jnp.dtype(dtype).itemsize, 8)


def _pick_rl(hw, sub):
    """Factor hw = R * L maximizing (sub, 128) vreg-tile utilization; ties go to
    the lane-dense (large L) split."""
    best_key, best_rl = None, (1, hw)
    for r in _divisors(hw):
        l = hw // r
        util = (r * l) / (_ceil_to(r, sub) * _ceil_to(l, _LANE))
        key = (util, l)
        if best_key is None or key > best_key:
            best_key, best_rl = key, (r, l)
    return best_rl


def _select_tiles(N, cpg, kb_cands, tile_bytes):
    """Pick (nb, kb): largest kb whose nb=1 tile fits the padded-VMEM cap, then
    the largest divisor of N that still fits; keep >=2 grid steps when possible
    so v7x can shard the (parallel) grid across its two TensorCores."""
    kb = kb_cands[-1]                      # smallest candidate as a fallback
    for k in kb_cands:                     # kb_cands is sorted descending
        if tile_bytes(1, k) <= _PAD_CAP_BYTES:
            kb = k
            break
    nb = 1
    for d in sorted(_divisors(N), reverse=True):
        if tile_bytes(d, kb) <= _PAD_CAP_BYTES:
            nb = d
            break
    if (N // nb) * (cpg // kb) < 2:
        if N >= 2:
            nb = max(d for d in _divisors(N) if d <= N // 2)
        else:
            for k in kb_cands:
                if cpg // k >= 2 and tile_bytes(nb, k) <= _PAD_CAP_BYTES:
                    kb = k
                    break
    return nb, kb


def channel_shuffle(x: jax.Array, groups: int) -> jax.Array:
    """Pallas TPU implementation of ChannelShuffle for NCHW input."""
    N, C, H, W = x.shape
    G = int(groups)
    assert C % G == 0, "channels must be divisible by groups"
    cpg = C // G
    HW = H * W
    itemsize = jnp.dtype(x.dtype).itemsize
    sub = _sublane_pack(x.dtype)

    cost = pl.CostEstimate(flops=0, transcendentals=0,
                           bytes_accessed=2 * N * C * HW * itemsize)
    cparams = pltpu.CompilerParams(
        dimension_semantics=("parallel", "parallel"),
        vmem_limit_bytes=_VMEM_LIMIT_BYTES,
    )

    if HW % _LANE == 0:
        # ---------------- lane-dense path (HW is 128-friendly) ----------------
        # input  view (N, G, cpg, HW)   -> block (nb, G, kb, HW)   (sublane = k)
        # output view (N, cpg, G * HW)  -> block (nb, kb, G * HW)  (sublane = k)
        kb_cands = sorted(
            {d for d in _divisors(cpg) if d % sub == 0 or d == cpg},
            reverse=True)

        def tile_bytes(nb, kb):
            in_b = nb * G * _ceil_to(kb, sub) * HW * itemsize
            out_b = nb * _ceil_to(kb, sub) * G * HW * itemsize
            return in_b + out_b

        nb, kb = _select_tiles(N, cpg, kb_cands, tile_bytes)
        grid = (N // nb, cpg // kb)

        def kernel(x_ref, o_ref):
            # x_ref: (nb, G, kb, HW); o_ref: (nb, kb, G*HW).
            # Group g lands at lane offset g*HW (a multiple of 128 here), so
            # every store is a full-width, unmasked vst with k on the sublanes.
            for g in range(G):
                o_ref[:, :, g * HW:(g + 1) * HW] = x_ref[:, g, :, :]

        out = pl.pallas_call(
            kernel,
            out_shape=jax.ShapeDtypeStruct((N, cpg, G * HW), x.dtype),
            grid_spec=pltpu.PrefetchScalarGridSpec(
                num_scalar_prefetch=0,
                grid=grid,
                in_specs=[pl.BlockSpec((nb, G, kb, HW),
                                       lambda i, j: (i, 0, j, 0))],
                out_specs=pl.BlockSpec((nb, kb, G * HW),
                                       lambda i, j: (i, j, 0)),
            ),
            compiler_params=cparams,
            cost_estimate=cost,
        )(x.reshape(N, G, cpg, HW))
        return out.reshape(N, C, H, W)

    # -------------- layout-safe path (HW not a multiple of 128) --------------
    # input  view (N, G, cpg, R, L) -> block (nb, G, kb, R, L)
    # output view (N, cpg, G, R, L) -> block (nb, kb, G, R, L)
    # The (g, k) swap only permutes leading (non-tiled) dims: the body is a set
    # of whole-tile copies, so it lowers cleanly for any shape / dtype.
    R, L = _pick_rl(HW, sub)
    kb_cands = sorted(_divisors(cpg), reverse=True)   # kb is a leading dim here

    def tile_bytes(nb, kb):
        plane = _ceil_to(R, sub) * _ceil_to(L, _LANE) * itemsize
        return 2 * nb * G * kb * plane

    nb, kb = _select_tiles(N, cpg, kb_cands, tile_bytes)
    grid = (N // nb, cpg // kb)

    def kernel(x_ref, o_ref):
        # x_ref: (nb, G, kb, R, L); o_ref: (nb, kb, G, R, L)
        for g in range(G):
            o_ref[:, :, g, :, :] = x_ref[:, g, :, :, :]

    out = pl.pallas_call(
        kernel,
        out_shape=jax.ShapeDtypeStruct((N, cpg, G, R, L), x.dtype),
        grid_spec=pltpu.PrefetchScalarGridSpec(
            num_scalar_prefetch=0,
            grid=grid,
            in_specs=[pl.BlockSpec((nb, G, kb, R, L),
                                   lambda i, j: (i, 0, j, 0, 0))],
            out_specs=pl.BlockSpec((nb, kb, G, R, L),
                                   lambda i, j: (i, j, 0, 0, 0)),
        ),
        compiler_params=cparams,
        cost_estimate=cost,
    )(x.reshape(N, G, cpg, R, L))
    return out.reshape(N, C, H, W)


def channel_shuffle_ref(x: jax.Array, groups: int) -> jax.Array:
    """Pure-JAX reference mirroring the PyTorch forward exactly."""
    N, C, H, W = x.shape
    y = x.reshape(N, groups, C // groups, H, W)
    y = jnp.transpose(y, (0, 2, 1, 3, 4))
    return y.reshape(N, C, H, W)


if __name__ == "__main__":
    key = jax.random.PRNGKey(0)
    k0, k1 = jax.random.split(key)

    # Config 1: module-sized input (batch=2, channels=4, 16x16), groups=2.
    # HW = 256 is 128-friendly -> exercises the lane-dense path.
    groups1 = 2
    x1 = jax.random.normal(k0, (2, 4, 16, 16), dtype=jnp.float32)
    out1 = jax.block_until_ready(channel_shuffle(x1, groups1))
    ref1 = channel_shuffle_ref(x1, groups1)
    assert out1.shape == ref1.shape == (2, 4, 16, 16)
    assert out1.dtype == ref1.dtype
    assert jnp.array_equal(out1, ref1), "mismatch vs reference (cfg1)"

    # Config 2: ShuffleNet-like 7x7 stage with groups=3 -> layout-safe path.
    groups2 = 3
    x2 = jax.random.normal(k1, (2, 6, 7, 7), dtype=jnp.float32)
    out2 = jax.block_until_ready(channel_shuffle(x2, groups2))
    ref2 = channel_shuffle_ref(x2, groups2)
    assert out2.shape == ref2.shape == (2, 6, 7, 7)
    assert out2.dtype == ref2.dtype
    assert jnp.array_equal(out2, ref2), "mismatch vs reference (cfg2)"

    print("KERNEL_OK")
</pallas_src>

<mosaic_0001>
module attributes {stable_mosaic.version = 11 : i64} {
  func.func @kernel(%arg0: i32, %arg1: i32, %arg2: memref<1x2x2x256xf32, #tpu.memory_space<vmem>>, %arg3: memref<1x2x512xf32, #tpu.memory_space<vmem>>) attributes {dimension_semantics = [#tpu.dimension_semantics<parallel>, #tpu.dimension_semantics<parallel>], iteration_bounds = array<i64: 2, 1>, scalar_prefetch = 0 : i64, scratch_operands = 0 : i64, tpu.core_type = #tpu.core_type<tc>, window_params = [{transform_indices = @transform_0, window_bounds = array<i64: 1, 2, 2, 256>}, {transform_indices = @transform_1, window_bounds = array<i64: 1, 2, 512>}]} {
    %c0 = arith.constant 0 : index
    %c0_0 = arith.constant 0 : index
    %c0_1 = arith.constant 0 : index
    %c0_2 = arith.constant 0 : index
    %0 = vector.load %arg2[%c0, %c0_0, %c0_1, %c0_2] : memref<1x2x2x256xf32, #tpu.memory_space<vmem>>, vector<1x1x2x256xf32>
    %1 = vector.shape_cast %0 : vector<1x1x2x256xf32> to vector<1x2x256xf32>
    %c0_3 = arith.constant 0 : index
    %c0_4 = arith.constant 0 : index
    %c0_5 = arith.constant 0 : index
    %2 = vector.load %arg3[%c0_3, %c0_4, %c0_5] : memref<1x2x512xf32, #tpu.memory_space<vmem>>, vector<1x2x256xf32>
    tpu.vector_store %arg3[%c0_3, %c0_4, %c0_5], %1 {strides = array<i32>} : memref<1x2x512xf32, #tpu.memory_space<vmem>>, vector<1x2x256xf32>,
    %c0_6 = arith.constant 0 : index
    %c1 = arith.constant 1 : index
    %c0_7 = arith.constant 0 : index
    %c0_8 = arith.constant 0 : index
    %3 = vector.load %arg2[%c0_6, %c1, %c0_7, %c0_8] : memref<1x2x2x256xf32, #tpu.memory_space<vmem>>, vector<1x1x2x256xf32>
    %4 = vector.shape_cast %3 : vector<1x1x2x256xf32> to vector<1x2x256xf32>
    %c0_9 = arith.constant 0 : index
    %c0_10 = arith.constant 0 : index
    %c256 = arith.constant 256 : index
    %5 = vector.load %arg3[%c0_9, %c0_10, %c256] : memref<1x2x512xf32, #tpu.memory_space<vmem>>, vector<1x2x256xf32>
    tpu.vector_store %arg3[%c0_9, %c0_10, %c256], %4 {strides = array<i32>} : memref<1x2x512xf32, #tpu.memory_space<vmem>>, vector<1x2x256xf32>,
    return
  }
  func.func @transform_0(%arg0: i32, %arg1: i32) -> (i32, i32, i32, i32) {
    %c0_i32 = arith.constant 0 : i32
    %c0_i32_0 = arith.constant 0 : i32
    %c0_i32_1 = arith.constant 0 : i32
    return %arg0, %c0_i32, %arg1, %c0_i32_0 : i32, i32, i32, i32
  }
  func.func @transform_1(%arg0: i32, %arg1: i32) -> (i32, i32, i32) {
    %c0_i32 = arith.constant 0 : i32
    %c0_i32_0 = arith.constant 0 : i32
    return %arg0, %arg1, %c0_i32 : i32, i32, i32
  }
}

</mosaic_0001>

<bundles_post_ra>
// kernel: tpu_custom_call.1
= control target key start
LH: loop header
LB: loop body
LE: loop exit
PB: predicated region body
PF: predicated region fallthrough
CT: control target
= control target key end

     0   :  { %6 = vsyncpa [#allocation3], 0  ;;  %s642_s0 = inlined_call_operand.hbm [shape: f32[2,2,2,256], index: 0, kind: input, shape index: {}]   ;;  %s643_s1 = inlined_call_operand.hbm [shape: f32[2,2,512], index: 1, kind: output, shape index: {}]  }
   0x1   :  { %8 = vsyncpa [#allocation3 + $0x1], 0 }
   0x2   :  { %9 = vsyncpa [#allocation4], 0 }
   0x3   :  { %11 = vsyncpa [#allocation4 + $0x1], 0  ;;  %s469_s6 = smov 0   ;;  %s471_s7 = smov 0  }
   0x4   :  { %s473_s8 = smov 0   ;;  %s475_s9 = smov 0  }
   0x5   :  { %s477_s10 = smov 0   ;;  %s479_s11 = smov 0  }
   0x6 LB: > { %s259_s12 = sadd.s32 4294967295, %s453_s11   ;;  %s260_s13 = sadd.s32 4294967294, %s453_s11   ;;  %s453_s11 = sphi %s479_s11, %s17_s11   ;;  %s449_s10 = sphi %s477_s10, %s658_s10   ;;  %s445_s9 = sphi %s475_s9, %s657_s9   ;;  %s441_s8 = sphi %s473_s8, %s656_s8   ;;  %s437_s7 = sphi %s471_s7, %s655_s7   ;;  %s433_s6 = sphi %s469_s6, %s654_s6  }
   0x7   : > { %s29_s14 = sadd.s32 1, %s449_s10  ;;  %s38_s15 = sadd.s32 1, %s441_s8 }
   0x8   : > { %p31_p0 = scmp.ge.s32.totalorder %s29_s14, 2  ;;  %p45_p1 = scmp.ne.s32.totalorder %s441_s8, %s437_s7 }
   0x9   : > { %p46_p2 = scmp.eq.s32.totalorder %s453_s11, 0  ;;  %p51_p3 = scmp.ne.s32.totalorder %s437_s7, %s433_s6 }
   0xa   : > { %s660_s14 = smov (%p31_p0, %s29_s14), 0  ;;  %p52_p5 = scmp.eq.s32.totalorder %s259_s12, 0 }
   0xb   : > { %p510_p4 = por %p46_p2, %p45_p1  ;;  %s33_s17 = ssub.s32 %s449_s10, %s660_s14 }
   0xc   : > { %p77_p6 = scmp.eq.s32.totalorder %s259_s12, 1  ;;  %p36_p7 = scmp.eq.s32.totalorder %s33_s17, 0 }
   0xd   : > { %p516_p8 = por %p52_p5, %p51_p3  ;;  %p83_p10 = scmp.eq.s32.totalorder %s260_s13, 1 }
   0xe   : > { %p520_p9 = por %p77_p6, %p45_p1  ;;  %p289_p13 = scmp.lt.s32.totalorder %s453_s11, 2 }
   0xf   : > { %s525_s20 = scalar_select %p36_p7, %s441_s8, %s38_s15  }
  0x10   : > { %s647_s19 = scalar_select %p520_p9, 1, 0 }
  0x11   : > { %p527_p11 = por %p83_p10, %p51_p3  ;;  %s103_s22 = sand.u32 1, %s441_s8  }
  0x12   : > { %s263_s23 = sshll.u32 %s103_s22, 3  ;;  %s275_s24 = sshll.u32 %s449_s10, 7 }
  0x13   : > { %s648_s21 = scalar_select %p527_p11, 1, 0 }
  0x14   : > { %s538_s27 = scalar_lea.hbm %s642_s0, %s275_s24  ;;  %s107_s28 = scalar_lea.vmem [#allocation2], %s263_s23 }
  0x15   : > { %s116_s29 = sshll.u32 %s107_s28, 4  ;;  %p544_p0 = pnand %p289_p13, %p510_p4  ;;  %s540_s29 = int_to_ptr.vmem [resolvable:$true] %s116_s29 }
  0x16   : > { %s549_s2 = scalar_lea.sflag [#allocation3], %s103_s22  ;;  %s341_s3 = scalar_lea.hbm %s538_s27, 128 }
  0x17   : > { %p342_p2 = scmp.ne.s32.totalorder %s538_s27, %s341_s3  ;;  %p343_p3 = pneg %p544_p0 }
  0x18   : > { %s346_s12 = scalar_lea.hbm %s642_s0, 256  ;;  %p347_p4 = scmp.lt.u32.totalorder %s538_s27, %s642_s0 }
  0x19   : > { %p344_p5 = pnand %p343_p3, %p342_p2  ;;  %p348_p7 = scmp.lt.u32.totalorder %s346_s12, %s341_s3 }
  0x1a   : > { %p350_p13 = scmp.lt.u32.totalorder %s341_s3, %s538_s27 }
  0x1b   : > { %p345_p6 = pneg %p344_p5  ;;  %p349_p10 = por %p348_p7, %p347_p4 }
  0x1d   : > { %p351_p12 = por %p350_p13, %p349_p10 }
  0x1f   : > { %p352_p1 = pnand %p351_p12, %p345_p6 }
  0x21   : > { %355 = shalt.err (!%p352_p1)
}
  0x22   : > { %s356_s16 = scalar_lea.vmem %s540_s29, 128  ;;  %s455_s17 = smov [#allocation2]  }
  0x23   : > { %p357_p2 = scmp.ne.s32.totalorder %s540_s29, %s356_s16  ;;  %s361_s22 = sshll.u32 %s455_s17, 4  ;;  %s362_s22 = int_to_ptr.vmem [resolvable:$false] %s361_s22 }
  0x24   : > { %s363_s23 = scalar_lea.vmem %s362_s22, 256  ;;  %p364_p9 = scmp.lt.s32.totalorder %s540_s29, %s362_s22 }
  0x25   : > { %p359_p5 = pnand %p357_p2, %p343_p3  ;;  %p365_p4 = scmp.lt.s32.totalorder %s363_s23, %s356_s16 }
  0x27   : > { %p360_p11 = pneg %p359_p5  ;;  %p366_p7 = por %p365_p4, %p364_p9 }
  0x29   : > { %p367_p10 = pnand %p366_p7, %p360_p11 }
  0x2b   : > { %370 = shalt.err (!%p367_p10)
}
  0x2c   : > { %s456_s24 = smov 64   ;;  %s457_s25 = smov 4  }
  0x2d   : > { %284 = dma.hbm_to_vmem [thread:$0]  (!%p544_p0), %s538_s27, 128, %s540_s29, %s549_s2, %s456_s24, %s456_s24, %s457_s25  }
  0x2e   : > { %p124_p12 = scmp.lt.s32.totalorder %s453_s11, 3  ;;  %p650_p1 = scmp.ge.s32.totalorder %s453_s11, 1 }
  0x30   : > { %p125_p3 = pnand %p650_p1, %p124_p12 }
  0x31   : > { %s581_s26 = sand.u32 (!%p125_p3), 1, %s437_s7  }
  0x32   : > { %128 = sbr.rel (%p125_p3) target bundleno = 84 (0x54), region = 24  ;;  %s267_s28 = sshll.u32 (!%p125_p3), %s581_s26, 3 }
  0x33   : > { %s131_s3 = scalar_lea.sflag (!%p125_p3), [#allocation3], %s581_s26  ;;  %s134_s4 = scalar_lea.vmem (!%p125_p3), [#allocation2], %s267_s28 }
  0x39   : > { %424 = dma.done.wait (%p516_p8), %s131_s3, 128  }
  0x3a   : > { %426 = vsyncadd (%p516_p8), %s131_s3, 4294967168  ;;  %s152_s27 = scalar_lea.vmem [#allocation5], %s267_s28  ;;  %s276_s30 = sshll.u32 %s445_s9, 7  ;;  %v153_v0 = vld [vmem:[%s134_s4] sm:$0xff]  }
  0x3b   : > { %s175_s29 = sshll.u32 %s152_s27, 4  ;;  %s595_s12 = scalar_lea.hbm %s643_s1, %s276_s30  ;;  %154 = vst [vmem:[%s152_s27] sm:$0xff] %v153_v0   ;;  %s590_s29 = int_to_ptr.vmem [resolvable:$true] %s175_s29 }
  0x3c   : > { %s159_s18 = scalar_lea.sflag [#allocation4], %s581_s26  ;;  %s371_s13 = scalar_lea.vmem %s590_s29, 128 }
  0x3d   : > { %p372_p8 = scmp.ne.s32.totalorder %s590_s29, %s371_s13  ;;  %p651_p9 = scmp.ne.s32.totalorder %s647_s19, 0 }
  0x3e   : > { %s458_s15 = smov [#allocation5]  }
  0x3f   : > { %p373_p11 = pnand %p372_p8, %p651_p9  ;;  %s375_s9 = sshll.u32 %s458_s15, 4  ;;  %s376_s9 = int_to_ptr.vmem [resolvable:$false] %s375_s9 }
  0x40   : > { %s377_s16 = scalar_lea.vmem %s376_s9, 256  ;;  %p378_p6 = scmp.lt.s32.totalorder %s590_s29, %s376_s9 }
  0x41   : > { %p374_p0 = pneg %p373_p11  ;;  %p379_p13 = scmp.lt.s32.totalorder %s377_s16, %s371_s13 }
  0x43   : > { %p380_p2 = por %p379_p13, %p378_p6 }
  0x45   : > { %p381_p5 = pnand %p380_p2, %p374_p0 }
  0x47   : > { %384 = shalt.err (!%p381_p5)
}
  0x48   : > { %s385_s17 = scalar_lea.hbm %s595_s12, 128  ;;  %s389_s24 = scalar_lea.hbm %s643_s1, 256 }
  0x49   : > { %p386_p4 = scmp.ne.s32.totalorder %s595_s12, %s385_s17  ;;  %p390_p12 = scmp.lt.u32.totalorder %s595_s12, %s643_s1 }
  0x4a   : > { %p391_p1 = scmp.lt.u32.totalorder %s389_s24, %s385_s17  ;;  %p393_p8 = scmp.lt.u32.totalorder %s385_s17, %s595_s12 }
  0x4b   : > { %p387_p7 = pnand %p386_p4, %p651_p9 }
  0x4c   : > { %p392_p3 = por %p391_p1, %p390_p12 }
  0x4d   : > { %p388_p10 = pneg %p387_p7 }
  0x4e   : > { %p394_p11 = por %p393_p8, %p392_p3 }
  0x50   : > { %p395_p0 = pnand %p394_p11, %p388_p10 }
  0x52   : > { %398 = shalt.err (!%p395_p0)
}
  0x53   : > { %279 = dma.vmem_to_hbm [thread:$0]  (%p651_p9), %s590_s29, 128, %s595_s12, %s159_s18  }
  0x54 PF: > { %s187_s28 = sand.u32 1, %s433_s6   ;;  %p652_p6 = scmp.ne.s32.totalorder %s648_s21, 0 }
  0x55   : > { %p653_p13 = scmp.ge.s32.totalorder %s453_s11, 2  ;;  %s188_s3 = scalar_lea.sflag [#allocation4], %s187_s28 }
  0x57   : > { %p286_p2 = pnand %p653_p13, %p652_p6 }
  0x59   : > { %428 = dma.done.wait (!%p286_p2), %s188_s3, 128  }
  0x5a   : > { %430 = vsyncadd (!%p286_p2), %s188_s3, 4294967168  ;;  %s17_s11 = sadd.s32 1, %s453_s11   ;;  %s654_s6 = smov %s437_s7 }
  0x5b   : > { %p14_p5 = scmp.ge.s32.totalorder %s17_s11, 4   ;;  %s655_s7 = smov %s441_s8 }
  0x5c   : > { %s656_s8 = smov %s525_s20  ;;  %s657_s9 = smov %s449_s10 }
  0x5d   : > { %s658_s10 = smov %s660_s14  ;;  %16 = sbr.rel (!%p14_p5) target bundleno = 6 (0x6), region = 70 }
  0x64   :  { %193 = vsyncpa [#allocation3], 1 }
  0x65   :  { %195 = vsyncpa [#allocation3 + $0x1], 1 }
  0x66   :  { %196 = vsyncpa [#allocation4], 1 }
  0x67   :  { %198 = vsyncpa [#allocation4 + $0x1], 1 }

</bundles_post_ra>
